<compile_context>
chip_gen: v7x
topology: tpu7x:2x2x1
jax: 0.10.0
libtpu: 0.0.40
codegen_flags: <defaults>
</compile_context>

<pallas_src>
import functools

import jax
import jax.numpy as jnp
from jax.experimental import pallas as pl
from jax.experimental.pallas import tpu as pltpu


_LN2 = 0.6931471805599453


def _sigmoid_tanh(z, act_dtype):
    # sigmoid(z) = 0.5 * (tanh(z / 2) + 1); tanh is a single EUP op and the
    # 0.5* / +1.0 ride otherwise-idle VPU slots.  Computed in act_dtype
    # (bf16 on v6e/v7x doubles EUP throughput).
    zh = (z * 0.5).astype(act_dtype)
    return (jnp.tanh(zh) + 1.0) * 0.5


def _uv_mlp_kernel(act_dtype,
                   x_ref,
                   w1_ref, b1_ref,
                   w2_ref, b2_ref,
                   w3_ref, b3_ref,
                   w4_ref, b4_ref,
                   o_ref):
    x = x_ref[...]                                        # (2, TM) f32

    # Layer 1: K = 2 -> skip the MXU, use two VPU broadcast-FMAs (outer products).
    w1 = w1_ref[...]                                      # (128, 2) f32
    z = w1[:, 0:1] * x[0:1, :] + w1[:, 1:2] * x[1:2, :] + b1_ref[...]   # (128, TM) f32
    h = _sigmoid_tanh(z, act_dtype)

    # Layers 2 & 3: (128,128) @ (128,TM) on the MXU, f32 accumulation.
    z = jnp.dot(w2_ref[...], h, preferred_element_type=jnp.float32) + b2_ref[...]
    h = _sigmoid_tanh(z, act_dtype)
    z = jnp.dot(w3_ref[...], h, preferred_element_type=jnp.float32) + b3_ref[...]
    h = _sigmoid_tanh(z, act_dtype)

    # Output layer + SoftplusReLU (in f32): max(softplus(z) - ln 2, 0).
    z = jnp.dot(w4_ref[...], h, preferred_element_type=jnp.float32) + b4_ref[...]  # (2, TM)
    out = jnp.maximum(jax.nn.softplus(z) - jnp.float32(_LN2), 0.0)
    o_ref[...] = out.astype(o_ref.dtype)                  # lane-dense (2, TM) store


def _full_spec(shape):
    # Constant index_map => block fetched once, stays resident in VMEM.
    ndim = len(shape)
    return pl.BlockSpec(shape, lambda i: (0,) * ndim)


@functools.partial(jax.jit, static_argnames=("act_dtype", "tm"))
def _uv_mlp_forward_impl(x, params, *, act_dtype, tm):
    n = x.shape[0]
    n_pad = pl.cdiv(n, tm) * tm
    grid = (n_pad // tm,)

    # Feature-major input: (2, n_pad) so kernel blocks are lane-dense.
    xt = x.astype(jnp.float32).T
    if n_pad != n:
        xt = jnp.pad(xt, ((0, 0), (0, n_pad - n)))

    # Pre-transpose weights to (out_features, in_features); biases to columns.
    # Hidden/output weights are cast to act_dtype (bf16 on v6e/v7x, f32 on v5e).
    w1t = params["w1"].T.astype(jnp.float32)               # (128, 2) stays f32 (VPU layer)
    w2t = params["w2"].T.astype(act_dtype)                 # (128, 128)
    w3t = params["w3"].T.astype(act_dtype)                 # (128, 128)
    w4t = params["w4"].T.astype(act_dtype)                 # (2, 128)
    b1c = params["b1"].reshape(-1, 1).astype(jnp.float32)  # (128, 1)
    b2c = params["b2"].reshape(-1, 1).astype(jnp.float32)  # (128, 1)
    b3c = params["b3"].reshape(-1, 1).astype(jnp.float32)  # (128, 1)
    b4c = params["b4"].reshape(-1, 1).astype(jnp.float32)  # (2, 1)

    out_t = pl.pallas_call(
        functools.partial(_uv_mlp_kernel, act_dtype),
        out_shape=jax.ShapeDtypeStruct((2, n_pad), jnp.float32),
        grid_spec=pltpu.PrefetchScalarGridSpec(
            num_scalar_prefetch=0,
            grid=grid,
            in_specs=[
                pl.BlockSpec((2, tm), lambda i: (0, i)),        # x tile (lane-dense)
                _full_spec((128, 2)), _full_spec((128, 1)),     # layer 1 (VPU)
                _full_spec((128, 128)), _full_spec((128, 1)),   # layer 2
                _full_spec((128, 128)), _full_spec((128, 1)),   # layer 3
                _full_spec((2, 128)), _full_spec((2, 1)),       # output layer
            ],
            out_specs=pl.BlockSpec((2, tm), lambda i: (0, i)),
        ),
        compiler_params=pltpu.CompilerParams(
            dimension_semantics=("parallel",),   # shards across v7x's 2 TensorCores
        ),
    )(xt, w1t, b1c, w2t, b2c, w3t, b3c, w4t, b4c)

    return out_t[:, :n].T                                   # (n, 2)


def _use_bf16_activations():
    """bf16 EUP/VPU exists on v6e/v7x only; keep f32 on v5e and older chips."""
    try:
        kind = jax.devices()[0].device_kind.lower()
    except Exception:
        return False
    return ("v6" in kind) or ("v7" in kind)


def _pick_tm(n, target=1024):
    """Large tiles amortize per-grid-step overhead, but keep >= 2 grid steps so
    the 'parallel' axis can shard across v7x's two TensorCores."""
    tm = target
    while tm > 128 and (n + tm - 1) // tm < 2:
        tm //= 2
    return max(tm, 128)


def uv_mlp_forward(x, params, *, act_dtype=None, tm=None):
    """x: (N, 2) float32.  params: dict of w1..w4 (in,out) / b1..b4 (1,out)."""
    if act_dtype is None:
        act_dtype = jnp.bfloat16 if _use_bf16_activations() else jnp.float32
    if tm is None:
        tm = _pick_tm(x.shape[0])
    return _uv_mlp_forward_impl(x, params, act_dtype=act_dtype, tm=tm)


def init_params(key):
    """Deterministic init matching torch.nn.Linear default U(-1/sqrt(fan_in), +1/sqrt(fan_in))."""
    dims = [(2, 128), (128, 128), (128, 128), (128, 2)]
    params = {}
    keys = jax.random.split(key, 2 * len(dims))
    for idx, (fan_in, fan_out) in enumerate(dims):
        bound = 1.0 / jnp.sqrt(jnp.float32(fan_in))
        w = jax.random.uniform(keys[2 * idx], (fan_in, fan_out),
                               minval=-bound, maxval=bound, dtype=jnp.float32)
        b = jax.random.uniform(keys[2 * idx + 1], (1, fan_out),
                               minval=-bound, maxval=bound, dtype=jnp.float32)
        params[f"w{idx + 1}"] = w
        params[f"b{idx + 1}"] = b
    return params


def _reference_forward(x, params):
    """Pure-JAX reference for correctness checking."""
    h = jax.nn.sigmoid(x @ params["w1"] + params["b1"])
    h = jax.nn.sigmoid(h @ params["w2"] + params["b2"])
    h = jax.nn.sigmoid(h @ params["w3"] + params["b3"])
    z = h @ params["w4"] + params["b4"]
    return jnp.maximum(jax.nn.softplus(z) - jnp.log(2.0), 0.0)


if __name__ == "__main__":
    key = jax.random.PRNGKey(0)
    k_params, k_x = jax.random.split(key)

    params = init_params(k_params)

    # (N, 2) inputs: x in [-10, 10], t in [0, 2] — typical BINNs (x, t) pairs.
    N = 256
    xs = jax.random.uniform(k_x, (N, 1), minval=-10.0, maxval=10.0, dtype=jnp.float32)
    ts = jax.random.uniform(jax.random.fold_in(k_x, 1), (N, 1),
                            minval=0.0, maxval=2.0, dtype=jnp.float32)
    inputs = jnp.concatenate([xs, ts], axis=1)

    ref = _reference_forward(inputs, params)

    # f32-activation path (runs on any chip): tight correctness check.
    out_f32 = jax.block_until_ready(uv_mlp_forward(inputs, params, act_dtype=jnp.float32))
    assert out_f32.shape == (N, 2), out_f32.shape
    assert jnp.allclose(out_f32, ref, atol=1e-3, rtol=1e-3), \
        float(jnp.max(jnp.abs(out_f32 - ref)))

    # Chip-tuned path (bf16 activations on v6e/v7x, f32 on v5e): looser check.
    out = jax.block_until_ready(uv_mlp_forward(inputs, params))
    assert out.shape == (N, 2), out.shape
    assert jnp.allclose(out, ref, atol=5e-2, rtol=5e-2), \
        float(jnp.max(jnp.abs(out - ref)))

    print("KERNEL_OK")
</pallas_src>

<mosaic_0001>
module attributes {stable_mosaic.version = 11 : i64} {
  func.func @_uv_mlp_kernel(%arg0: i32, %arg1: memref<2x128xf32, #tpu.memory_space<vmem>>, %arg2: memref<128x2xf32, #tpu.memory_space<vmem>>, %arg3: memref<128x1xf32, #tpu.memory_space<vmem>>, %arg4: memref<128x128xf32, #tpu.memory_space<vmem>>, %arg5: memref<128x1xf32, #tpu.memory_space<vmem>>, %arg6: memref<128x128xf32, #tpu.memory_space<vmem>>, %arg7: memref<128x1xf32, #tpu.memory_space<vmem>>, %arg8: memref<2x128xf32, #tpu.memory_space<vmem>>, %arg9: memref<2x1xf32, #tpu.memory_space<vmem>>, %arg10: memref<2x128xf32, #tpu.memory_space<vmem>>) attributes {dimension_semantics = [#tpu.dimension_semantics<parallel>], iteration_bounds = array<i64: 2>, scalar_prefetch = 0 : i64, scratch_operands = 0 : i64, tpu.core_type = #tpu.core_type<tc>, window_params = [{transform_indices = @transform_0, window_bounds = array<i64: 2, 128>}, {pipeline_mode = #tpu.pipeline_mode<synchronous>, transform_indices = @transform_1, window_bounds = array<i64: 128, 2>}, {pipeline_mode = #tpu.pipeline_mode<synchronous>, transform_indices = @transform_2, window_bounds = array<i64: 128, 1>}, {pipeline_mode = #tpu.pipeline_mode<synchronous>, transform_indices = @transform_3, window_bounds = array<i64: 128, 128>}, {pipeline_mode = #tpu.pipeline_mode<synchronous>, transform_indices = @transform_4, window_bounds = array<i64: 128, 1>}, {pipeline_mode = #tpu.pipeline_mode<synchronous>, transform_indices = @transform_5, window_bounds = array<i64: 128, 128>}, {pipeline_mode = #tpu.pipeline_mode<synchronous>, transform_indices = @transform_6, window_bounds = array<i64: 128, 1>}, {pipeline_mode = #tpu.pipeline_mode<synchronous>, transform_indices = @transform_7, window_bounds = array<i64: 2, 128>}, {pipeline_mode = #tpu.pipeline_mode<synchronous>, transform_indices = @transform_8, window_bounds = array<i64: 2, 1>}, {transform_indices = @transform_9, window_bounds = array<i64: 2, 128>}]} {
    %c0 = arith.constant 0 : index
    %c0_0 = arith.constant 0 : index
    %0 = vector.load %arg1[%c0, %c0_0] : memref<2x128xf32, #tpu.memory_space<vmem>>, vector<2x128xf32>
    %c0_1 = arith.constant 0 : index
    %c0_2 = arith.constant 0 : index
    %1 = vector.load %arg2[%c0_1, %c0_2] : memref<128x2xf32, #tpu.memory_space<vmem>>, vector<128x2xf32>
    %2 = vector.extract_strided_slice %1 {offsets = [0, 0], sizes = [128, 1], strides = [1, 1]} : vector<128x2xf32> to vector<128x1xf32>
    %3 = vector.extract_strided_slice %0 {offsets = [0, 0], sizes = [1, 128], strides = [1, 1]} : vector<2x128xf32> to vector<1x128xf32>
    %4 = vector.broadcast %2 : vector<128x1xf32> to vector<128x128xf32>
    %5 = vector.broadcast %3 : vector<1x128xf32> to vector<128x128xf32>
    %6 = arith.mulf %4, %5 : vector<128x128xf32>
    %7 = vector.extract_strided_slice %1 {offsets = [0, 1], sizes = [128, 1], strides = [1, 1]} : vector<128x2xf32> to vector<128x1xf32>
    %8 = vector.extract_strided_slice %0 {offsets = [1, 0], sizes = [1, 128], strides = [1, 1]} : vector<2x128xf32> to vector<1x128xf32>
    %9 = vector.broadcast %7 : vector<128x1xf32> to vector<128x128xf32>
    %10 = vector.broadcast %8 : vector<1x128xf32> to vector<128x128xf32>
    %11 = arith.mulf %9, %10 : vector<128x128xf32>
    %12 = arith.addf %6, %11 : vector<128x128xf32>
    %c0_3 = arith.constant 0 : index
    %c0_4 = arith.constant 0 : index
    %13 = vector.load %arg3[%c0_3, %c0_4] : memref<128x1xf32, #tpu.memory_space<vmem>>, vector<128x1xf32>
    %14 = vector.broadcast %13 : vector<128x1xf32> to vector<128x128xf32>
    %15 = arith.addf %12, %14 : vector<128x128xf32>
    %cst = arith.constant 5.000000e-01 : f32
    %16 = vector.broadcast %cst : f32 to vector<128x128xf32>
    %17 = arith.mulf %15, %16 : vector<128x128xf32>
    %18 = math.tanh %17 : vector<128x128xf32>
    %cst_5 = arith.constant 1.000000e+00 : f32
    %19 = vector.broadcast %cst_5 : f32 to vector<128x128xf32>
    %20 = arith.addf %18, %19 : vector<128x128xf32>
    %cst_6 = arith.constant 5.000000e-01 : f32
    %21 = vector.broadcast %cst_6 : f32 to vector<128x128xf32>
    %22 = arith.mulf %20, %21 : vector<128x128xf32>
    %c0_7 = arith.constant 0 : index
    %c0_8 = arith.constant 0 : index
    %23 = vector.load %arg4[%c0_7, %c0_8] : memref<128x128xf32, #tpu.memory_space<vmem>>, vector<128x128xf32>
    %cst_9 = arith.constant dense<0.000000e+00> : vector<128x128xf32>
    %24 = tpu.matmul %23, %22, %cst_9 {dimension_numbers = #tpu.dot_dimension_numbers<[1], [0], [0], [1], [0, 0, 1, 1], [], []>} : vector<128x128xf32>, vector<128x128xf32>, vector<128x128xf32> -> vector<128x128xf32>
    %c0_10 = arith.constant 0 : index
    %c0_11 = arith.constant 0 : index
    %25 = vector.load %arg5[%c0_10, %c0_11] : memref<128x1xf32, #tpu.memory_space<vmem>>, vector<128x1xf32>
    %26 = vector.broadcast %25 : vector<128x1xf32> to vector<128x128xf32>
    %27 = arith.addf %24, %26 : vector<128x128xf32>
    %cst_12 = arith.constant 5.000000e-01 : f32
    %28 = vector.broadcast %cst_12 : f32 to vector<128x128xf32>
    %29 = arith.mulf %27, %28 : vector<128x128xf32>
    %30 = math.tanh %29 : vector<128x128xf32>
    %cst_13 = arith.constant 1.000000e+00 : f32
    %31 = vector.broadcast %cst_13 : f32 to vector<128x128xf32>
    %32 = arith.addf %30, %31 : vector<128x128xf32>
    %cst_14 = arith.constant 5.000000e-01 : f32
    %33 = vector.broadcast %cst_14 : f32 to vector<128x128xf32>
    %34 = arith.mulf %32, %33 : vector<128x128xf32>
    %c0_15 = arith.constant 0 : index
    %c0_16 = arith.constant 0 : index
    %35 = vector.load %arg6[%c0_15, %c0_16] : memref<128x128xf32, #tpu.memory_space<vmem>>, vector<128x128xf32>
    %cst_17 = arith.constant dense<0.000000e+00> : vector<128x128xf32>
    %36 = tpu.matmul %35, %34, %cst_17 {dimension_numbers = #tpu.dot_dimension_numbers<[1], [0], [0], [1], [0, 0, 1, 1], [], []>} : vector<128x128xf32>, vector<128x128xf32>, vector<128x128xf32> -> vector<128x128xf32>
    %c0_18 = arith.constant 0 : index
    %c0_19 = arith.constant 0 : index
    %37 = vector.load %arg7[%c0_18, %c0_19] : memref<128x1xf32, #tpu.memory_space<vmem>>, vector<128x1xf32>
    %38 = vector.broadcast %37 : vector<128x1xf32> to vector<128x128xf32>
    %39 = arith.addf %36, %38 : vector<128x128xf32>
    %cst_20 = arith.constant 5.000000e-01 : f32
    %40 = vector.broadcast %cst_20 : f32 to vector<128x128xf32>
    %41 = arith.mulf %39, %40 : vector<128x128xf32>
    %42 = math.tanh %41 : vector<128x128xf32>
    %cst_21 = arith.constant 1.000000e+00 : f32
    %43 = vector.broadcast %cst_21 : f32 to vector<128x128xf32>
    %44 = arith.addf %42, %43 : vector<128x128xf32>
    %cst_22 = arith.constant 5.000000e-01 : f32
    %45 = vector.broadcast %cst_22 : f32 to vector<128x128xf32>
    %46 = arith.mulf %44, %45 : vector<128x128xf32>
    %c0_23 = arith.constant 0 : index
    %c0_24 = arith.constant 0 : index
    %47 = vector.load %arg8[%c0_23, %c0_24] : memref<2x128xf32, #tpu.memory_space<vmem>>, vector<2x128xf32>
    %cst_25 = arith.constant dense<0.000000e+00> : vector<2x128xf32>
    %48 = tpu.matmul %47, %46, %cst_25 {dimension_numbers = #tpu.dot_dimension_numbers<[1], [0], [0], [1], [0, 0, 1, 1], [], []>} : vector<2x128xf32>, vector<128x128xf32>, vector<2x128xf32> -> vector<2x128xf32>
    %c0_26 = arith.constant 0 : index
    %c0_27 = arith.constant 0 : index
    %49 = vector.load %arg9[%c0_26, %c0_27] : memref<2x1xf32, #tpu.memory_space<vmem>>, vector<2x1xf32>
    %50 = vector.broadcast %49 : vector<2x1xf32> to vector<2x128xf32>
    %51 = arith.addf %48, %50 : vector<2x128xf32>
    %cst_28 = arith.constant 0.000000e+00 : f32
    %52 = vector.broadcast %cst_28 : f32 to vector<2x128xf32>
    %53 = arith.maximumf %51, %52 : vector<2x128xf32>
    %54 = vector.broadcast %cst_28 : f32 to vector<2x128xf32>
    %55 = arith.subf %51, %54 : vector<2x128xf32>
    %56 = arith.cmpf one, %55, %55 : vector<2x128xf32>
    %57 = vector.broadcast %cst_28 : f32 to vector<2x128xf32>
    %58 = arith.addf %51, %57 : vector<2x128xf32>
    %59 = math.absf %55 : vector<2x128xf32>
    %cst_29 = arith.constant 0.000000e+00 : f32
    %60 = vector.broadcast %cst_29 : f32 to vector<2x128xf32>
    %61 = arith.subf %60, %59 : vector<2x128xf32>
    %62 = math.exp %61 : vector<2x128xf32>
    %63 = math.log1p %62 : vector<2x128xf32>
    %64 = arith.addf %53, %63 : vector<2x128xf32>
    %65 = arith.select %56, %58, %64 : vector<2x128xi1>, vector<2x128xf32>
    %cst_30 = arith.constant 0.693147182 : f32
    %66 = vector.broadcast %cst_30 : f32 to vector<2x128xf32>
    %67 = arith.subf %65, %66 : vector<2x128xf32>
    %cst_31 = arith.constant 0.000000e+00 : f32
    %68 = vector.broadcast %cst_31 : f32 to vector<2x128xf32>
    %69 = arith.maximumf %67, %68 : vector<2x128xf32>
    %c0_32 = arith.constant 0 : index
    %c0_33 = arith.constant 0 : index
    %70 = vector.load %arg10[%c0_32, %c0_33] : memref<2x128xf32, #tpu.memory_space<vmem>>, vector<2x128xf32>
    tpu.vector_store %arg10[%c0_32, %c0_33], %69 {strides = array<i32>} : memref<2x128xf32, #tpu.memory_space<vmem>>, vector<2x128xf32>,
    return
  }
  func.func @transform_0(%arg0: i32) -> (i32, i32) {
    %c0_i32 = arith.constant 0 : i32
    %c0_i32_0 = arith.constant 0 : i32
    return %c0_i32, %arg0 : i32, i32
  }
  func.func @transform_1(%arg0: i32) -> (i32, i32) {
    %c0_i32 = arith.constant 0 : i32
    %c0_i32_0 = arith.constant 0 : i32
    %c0_i32_1 = arith.constant 0 : i32
    return %c0_i32, %c0_i32_0 : i32, i32
  }
  func.func @transform_2(%arg0: i32) -> (i32, i32) {
    %c0_i32 = arith.constant 0 : i32
    %c0_i32_0 = arith.constant 0 : i32
    %c0_i32_1 = arith.constant 0 : i32
    return %c0_i32, %c0_i32_0 : i32, i32
  }
  func.func @transform_3(%arg0: i32) -> (i32, i32) {
    %c0_i32 = arith.constant 0 : i32
    %c0_i32_0 = arith.constant 0 : i32
    %c0_i32_1 = arith.constant 0 : i32
    return %c0_i32, %c0_i32_0 : i32, i32
  }
  func.func @transform_4(%arg0: i32) -> (i32, i32) {
    %c0_i32 = arith.constant 0 : i32
    %c0_i32_0 = arith.constant 0 : i32
    %c0_i32_1 = arith.constant 0 : i32
    return %c0_i32, %c0_i32_0 : i32, i32
  }
  func.func @transform_5(%arg0: i32) -> (i32, i32) {
    %c0_i32 = arith.constant 0 : i32
    %c0_i32_0 = arith.constant 0 : i32
    %c0_i32_1 = arith.constant 0 : i32
    return %c0_i32, %c0_i32_0 : i32, i32
  }
  func.func @transform_6(%arg0: i32) -> (i32, i32) {
    %c0_i32 = arith.constant 0 : i32
    %c0_i32_0 = arith.constant 0 : i32
    %c0_i32_1 = arith.constant 0 : i32
    return %c0_i32, %c0_i32_0 : i32, i32
  }
  func.func @transform_7(%arg0: i32) -> (i32, i32) {
    %c0_i32 = arith.constant 0 : i32
    %c0_i32_0 = arith.constant 0 : i32
    %c0_i32_1 = arith.constant 0 : i32
    return %c0_i32, %c0_i32_0 : i32, i32
  }
  func.func @transform_8(%arg0: i32) -> (i32, i32) {
    %c0_i32 = arith.constant 0 : i32
    %c0_i32_0 = arith.constant 0 : i32
    %c0_i32_1 = arith.constant 0 : i32
    return %c0_i32, %c0_i32_0 : i32, i32
  }
  func.func @transform_9(%arg0: i32) -> (i32, i32) {
    %c0_i32 = arith.constant 0 : i32
    %c0_i32_0 = arith.constant 0 : i32
    return %c0_i32, %arg0 : i32, i32
  }
}

</mosaic_0001>

<bundles_post_ra>
// kernel: _uv_mlp_forward_impl.1
= control target key start
LH: loop header
LB: loop body
LE: loop exit
PB: predicated region body
PF: predicated region fallthrough
CT: control target
= control target key end

     0   :  { %14 = vsyncpa [#allocation3], 0  ;;  %s2628_s0 = inlined_call_operand.vmem [shape: f32[2,256], index: 0, kind: input, shape index: {}]   ;;  %s2629_s1 = inlined_call_operand.vmem [shape: f32[128,2], index: 1, kind: input, shape index: {}]   ;;  %s2630_s2 = inlined_call_operand.vmem [shape: f32[128,1], index: 2, kind: input, shape index: {}]   ;;  %s2631_s3 = inlined_call_operand.vmem [shape: f32[128,128], index: 3, kind: input, shape index: {}]   ;;  %s2632_s4 = inlined_call_operand.vmem [shape: f32[128,1], index: 4, kind: input, shape index: {}]   ;;  %s2633_s5 = inlined_call_operand.vmem [shape: f32[128,128], index: 5, kind: input, shape index: {}]   ;;  %s2634_s6 = inlined_call_operand.vmem [shape: f32[128,1], index: 6, kind: input, shape index: {}]   ;;  %s2635_s7 = inlined_call_operand.vmem [shape: f32[2,128], index: 7, kind: input, shape index: {}]   ;;  %s2636_s8 = inlined_call_operand.vmem [shape: f32[2,1], index: 8, kind: input, shape index: {}]   ;;  %s2637_s9 = inlined_call_operand.hbm [shape: f32[2,256], index: 9, kind: output, shape index: {}]  }
   0x1   :  { %16 = vsyncpa [#allocation3 + $0x1], 0  ;;  %s2143_s30 = smov 0   ;;  %s2145_s10 = smov 0  }
   0x2   :  { %s2147_s11 = smov 0   ;;  %s2149_s12 = smov 0  }
   0x3 LB: > { %s2164_s13 = sadd.s32 4294967295, %s2085_s12   ;;  %s1534_s14 = sadd.s32 4294967294, %s2085_s12   ;;  %s2085_s12 = sphi %s2149_s12, %s2643_s12   ;;  %s2081_s11 = sphi %s2147_s11, %s2642_s11   ;;  %s2077_s10 = sphi %s2145_s10, %s2641_s10   ;;  %s2073_s30 = sphi %s2143_s30, %s2640_s30  }
   0x4   : > { %s2168_s15 = sadd.s32 1, %s2085_s12   ;;  %s223_s16 = sadd.s32 1, %s2081_s11 }
   0x5   : > { %s220_s17 = ssub.s32 %s2085_s12, %s2168_s15  ;;  %p233_p0 = scmp.ne.s32.totalorder %s2081_s11, %s2077_s10 }
   0x6   : > { %p221_p1 = scmp.eq.s32.totalorder %s220_s17, 0  ;;  %p234_p2 = scmp.eq.s32.totalorder %s2164_s13, 1 }
   0x7   : > { %p239_p3 = scmp.ne.s32.totalorder %s2077_s10, %s2073_s30  ;;  %p240_p4 = scmp.eq.s32.totalorder %s1534_s14, 1 }
   0x8   : > { %s2179_s18 = scalar_select %p221_p1, %s2081_s11, %s223_s16  }
   0x9   : > { %p2181_p5 = por %p234_p2, %p233_p0  ;;  %p2185_p6 = por %p240_p4, %p239_p3 }
   0xa   : > { %p1537_p7 = scmp.ge.s32.totalorder %s2085_s12, 1  ;;  %p289_p8 = scmp.lt.s32.totalorder %s2085_s12, 3 }
   0xc   : > { %p290_p9 = pnand %p1537_p7, %p289_p8 }
   0xd   : > { %v331_v0 = vld [vmem:[%s2629_s1 + $0x10] sm:$0xff] (!%p290_p9)  ;;  %v329_v1 = vld [vmem:[%s2629_s1] sm:$0xff] (!%p290_p9)  ;;  %v2087_v2 = vmov (!%p290_p9), 1   ;;  %v330_v4 = vld [vmem:[%s2629_s1 + $0x8] sm:$0xff] (!%p290_p9)  ;;  %v2088_v7 = vmov (!%p290_p9), 0   ;;  %p324_p10 = scmp.lt.s32.totalorder (!%p290_p9), %s2164_s13, 1  ;;  %v425_v60 = vlaneseq (!%p290_p9) }
   0xe   : > { %293 = sbr.rel (%p290_p9) target bundleno = 1102 (0x44e), region = 56  ;;  %1907 = vset.pattern.permute.xlu0 (!%p290_p9), %v2087_v2  ;;  %1905 = vset.pattern.permute.xlu1 (!%p290_p9), %v2087_v2  ;;  %v333_v3 = vld [vmem:[%s2629_s1 + $0x20] sm:$0xff] (!%p290_p9)  ;;  %v335_v5 = vld [vmem:[%s2629_s1 + $0x30] sm:$0xff] (!%p290_p9)  ;;  %v332_v6 = vld [vmem:[%s2629_s1 + $0x18] sm:$0xff] (!%p290_p9)  ;;  %vm2090_vm0 = vmmov (!%p290_p9), 0   ;;  %s321_s14 = sand.u32 (!%p290_p9), 1, %s2077_s10  }
   0xf   : > { %454 = vperm.xlu0 (!%p290_p9), %1907, %v331_v0   ;;  %446 = vperm.xlu1 (!%p290_p9), %1905, %v329_v1   ;;  %v337_v8 = vld [vmem:[%s2629_s1 + $0x40] sm:$0xff] (!%p290_p9)  ;;  %v339_v9 = vld [vmem:[%s2629_s1 + $0x50] sm:$0xff] (!%p290_p9)  ;;  %v334_v13 = vld [vmem:[%s2629_s1 + $0x28] sm:$0xff] (!%p290_p9)  ;;  %s1538_s16 = sshll.u32 (!%p290_p9), %s321_s14, 1  ;;  %s1542_s17 = sshll.u32 (!%p290_p9), %s2164_s13, 5 }
  0x10   : > { %v545_v10 = vld [vmem:[%s2630_s2] sm:$0xff] (!%p290_p9)  ;;  %v2232_v12 = vld [vmem:[%s2629_s1 + $0x70] sm:$0xff] (!%p290_p9)  ;;  %v546_v15 = vld [vmem:[%s2630_s2 + $0x8] sm:$0xff] (!%p290_p9)  ;;  %s1462_s26 = scalar_lea.sflag (!%p290_p9), [#allocation3], %s321_s14 }
  0x11   : > { %v2225_v11 = vld [vmem:[%s2629_s1 + $0x60] sm:$0xff] (!%p290_p9)  ;;  %v547_v14 = vld [vmem:[%s2630_s2 + $0x10] sm:$0xff] (!%p290_p9)  ;;  %v548_v16 = vld [vmem:[%s2630_s2 + $0x18] sm:$0xff] (!%p290_p9) }
  0x12   : > { %v336_v17 = vld [vmem:[%s2629_s1 + $0x38] sm:$0xff] (!%p290_p9)  ;;  %v550_v18 = vld [vmem:[%s2630_s2 + $0x28] sm:$0xff] (!%p290_p9)  ;;  %v549_v20 = vld [vmem:[%s2630_s2 + $0x20] sm:$0xff] (!%p290_p9) }
  0x13   : > { %462 = vperm.xlu0 (!%p290_p9), %1907, %v333_v3   ;;  %450 = vperm.xlu1 (!%p290_p9), %1905, %v330_v4   ;;  %v552_v19 = vld [vmem:[%s2630_s2 + $0x38] sm:$0xff] (!%p290_p9)  ;;  %v554_v21 = vld [vmem:[%s2630_s2 + $0x48] sm:$0xff] (!%p290_p9)  ;;  %v737_v25 = vld [vmem:[%s2632_s4] sm:$0xff] (!%p290_p9) }
  0x14   : > { %v556_v22 = vld [vmem:[%s2630_s2 + $0x58] sm:$0xff] (!%p290_p9)  ;;  %v338_v23 = vld [vmem:[%s2629_s1 + $0x48] sm:$0xff] (!%p290_p9)  ;;  %v739_v26 = vld [vmem:[%s2632_s4 + $0x10] sm:$0xff] (!%p290_p9) }
  0x15   : > { %v558_v24 = vld [vmem:[%s2630_s2 + $0x68] sm:$0xff]  ;;  %v551_v27 = vld [vmem:[%s2630_s2 + $0x30] sm:$0xff]  ;;  %v741_v28 = vld [vmem:[%s2632_s4 + $0x20] sm:$0xff]  ;;  %s325_s25 = scalar_select %p324_p10, %s2164_s13, 1 }
  0x16   : > { %v743_v29 = vld [vmem:[%s2632_s4 + $0x30] sm:$0xff]  ;;  %v340_v30 = vld [vmem:[%s2629_s1 + $0x58] sm:$0xff]  ;;  %v745_v31 = vld [vmem:[%s2632_s4 + $0x40] sm:$0xff]  ;;  %s2092_s13 = smov [#allocation2]  }
  0x17   : > { %470 = vperm.xlu0 %1907, %v335_v5   ;;  %1906 = vset.pattern.permute.xlu1 %v2088_v7  ;;  %v747_v32 = vld [vmem:[%s2632_s4 + $0x50] sm:$0xff]  ;;  %v553_v33 = vld [vmem:[%s2630_s2 + $0x40] sm:$0xff]  ;;  %v342_v36 = vld [vmem:[%s2629_s1 + $0x68] sm:$0xff]  ;;  %s1539_s28 = sshll.u32 %s325_s25, 1  ;;  %s2586_s25 = scalar_lea.hbm %s2637_s9, %s1542_s17 }
  0x18   : > { %362 = vperm.xlu1 %1906, %v332_v6   ;;  %v749_v34 = vld [vmem:[%s2632_s4 + $0x60] sm:$0xff]  ;;  %v751_v35 = vld [vmem:[%s2632_s4 + $0x70] sm:$0xff]  ;;  %v344_v43 = vld [vmem:[%s2629_s1 + $0x78] sm:$0xff]  ;;  %s327_s21 = scalar_lea.vmem %s2628_s0, %s1539_s28  ;;  %s2027_s28 = sshll.u32 %s2092_s13, 4  ;;  %s2028_s28 = int_to_ptr.vmem [resolvable:$false] %s2027_s28 }
  0x19   : > { %v1058_v37 = vld [vmem:[%s2634_s6] sm:$0xff]  ;;  %v1060_v38 = vld [vmem:[%s2634_s6 + $0x10] sm:$0xff]  ;;  %v560_v54 = vld [vmem:[%s2630_s2 + $0x78] sm:$0xff]  ;;  %s2029_s29 = scalar_lea.vmem %s2028_s28, 64 }
  0x1a   : > { %v1062_v39 = vld [vmem:[%s2634_s6 + $0x20] sm:$0xff]  ;;  %v555_v40 = vld [vmem:[%s2630_s2 + $0x50] sm:$0xff]  ;;  %v738_v57 = vld [vmem:[%s2632_s4 + $0x8] sm:$0xff] }
  0x1b   : > { %478 = vperm.xlu0 %1907, %v337_v8   ;;  %v1064_v41 = vld [vmem:[%s2634_s6 + $0x30] sm:$0xff]  ;;  %v1066_v42 = vld [vmem:[%s2634_s6 + $0x40] sm:$0xff]  ;;  %v740_v59 = vld [vmem:[%s2632_s4 + $0x18] sm:$0xff] }
  0x1c   : > { %1908 = vset.pattern.permute.xlu1 %v2087_v2  ;;  %v1068_v44 = vld [vmem:[%s2634_s6 + $0x50] sm:$0xff]  ;;  %v1070_v45 = vld [vmem:[%s2634_s6 + $0x60] sm:$0xff]  ;;  %v742_v63 = vld [vmem:[%s2632_s4 + $0x28] sm:$0xff] }
  0x1d   : > { %458 = vperm.xlu1 %1908, %v332_v6   ;;  %v557_v46 = vld [vmem:[%s2630_s2 + $0x60] sm:$0xff]  ;;  %v1072_v47 = vld [vmem:[%s2634_s6 + $0x70] sm:$0xff] }
  0x1e   : > { %v559_v50 = vld [vmem:[%s2630_s2 + $0x70] sm:$0xff]  ;;  %v1364_v51 = vld [vmem:[%s2636_s8] sm:$0x3] }
  0x1f   : > { %486 = vperm.xlu0 %1907, %v339_v9  }
  0x21   : > { %1909 = vset.pattern.permute.xlu1 %v2088_v7 }
  0x22   : > { %563 = vperm.xlu1 %1909, %v545_v10  }
  0x23   : > { %494 = vperm.xlu0 %1907, %v2225_v11  }
  0x26   : > { %367 = vperm.xlu1 %1909, %v333_v3   ;;  %v744_v3 = vld [vmem:[%s2632_s4 + $0x38] sm:$0xff] }
  0x27   : > { %502 = vperm.xlu0 %1907, %v2232_v12  }
  0x2a   : > { %372 = vperm.xlu1 %1909, %v334_v13  }
  0x2b   : > { %1920 = vset.pattern.permute.xlu0 %v2088_v7 }
  0x2c   : > { %347 = vperm.xlu0 %1920, %v329_v1  }
  0x2e   : > { %1910 = vset.pattern.permute.xlu1 %v2087_v2 }
  0x2f   : > { %466 = vperm.xlu1 %1910, %v334_v13  }
  0x30   : > { %352 = vperm.xlu0 %1920, %v330_v4  }
  0x33   : > { %1911 = vset.pattern.permute.xlu1 %v2088_v7 }
  0x34   : > { %357 = vperm.xlu0 %1920, %v331_v0   ;;  %573 = vperm.xlu1 %1911, %v547_v14   ;;  %v426_v0 = vshrl.u32 %v425_v60, 7  ;;  %v748_v14 = vld [vmem:[%s2632_s4 + $0x58] sm:$0xff] }
  0x36   : > { %v511_v4 = vsub.s32 1, %v426_v0 }
  0x38   : > { %568 = vperm.xlu0 %1920, %v546_v15   ;;  %377 = vperm.xlu1 %1911, %v335_v5   ;;  %v328_v5 = vld [vmem:[%s327_s21] sm:$0x3]  ;;  %s323_s21 = scalar_lea.vmem [#allocation2], %s1538_s16 }
  0x39   : > { %v2396_v10 = vrot.slane %v328_v5, %v511_v4  ;;  %s1475_s22 = sshll.u32 %s323_s21, 4  ;;  %s2588_s22 = int_to_ptr.vmem [resolvable:$true] %s1475_s22 }
  0x3a   : > { %s2023_s27 = scalar_lea.vmem %s2588_s22, 32  ;;  %p2030_p0 = scmp.lt.s32.totalorder %s2588_s22, %s2028_s28 }
  0x3b   : > { %p2024_p11 = scmp.ne.s32.totalorder %s2588_s22, %s2023_s27  ;;  %p2031_p1 = scmp.lt.s32.totalorder %s2029_s29, %s2023_s27 }
  0x3c   : > { %578 = vperm.xlu0 %1920, %v548_v16   ;;  %382 = vperm.xlu1 %1911, %v336_v17  }
  0x3d   : > { %p2025_p12 = pnand %p2024_p11, %p2181_p5  ;;  %p2032_p2 = por %p2031_p1, %p2030_p0 }
  0x3f   : > { %p2026_p13 = pneg %p2025_p12 }
  0x40   : > { %588 = vperm.xlu0 %1920, %v550_v18   ;;  %1912 = vset.pattern.permute.xlu1 %v2087_v2 }
  0x41   : > { %474 = vperm.xlu1 %1912, %v336_v17   ;;  %v721_v17 = vld [vmem:[%s2631_s3] sm:$0xff]  ;;  %p2033_p3 = pnand %p2032_p2, %p2026_p13 }
  0x42   : > { %1658 = vmatprep.mubr.f32.mxu0 %v721_v17 }
  0x44   : > { %598 = vperm.xlu0 %1920, %v552_v19  }
  0x45   : > { %1913 = vset.pattern.permute.xlu1 %v2088_v7 }
  0x46   : > { %583 = vperm.xlu1 %1913, %v549_v20  }
  0x48   : > { %608 = vperm.xlu0 %1920, %v554_v21   ;;  %v750_v21 = vld [vmem:[%s2632_s4 + $0x68] sm:$0xff] }
  0x4a   : > { %387 = vperm.xlu1 %1913, %v337_v8  }
  0x4c   : > { %618 = vperm.xlu0 %1920, %v556_v22  }
  0x4e   : > { %392 = vperm.xlu1 %1913, %v338_v23  }
  0x50   : > { %628 = vperm.xlu0 %1920, %v558_v24  }
  0x52   : > { %1914 = vset.pattern.permute.xlu1 %v2087_v2 }
  0x53   : > { %482 = vperm.xlu1 %1914, %v338_v23  }
  0x54   : > { %755 = vperm.xlu0 %1920, %v737_v25  }
  0x57   : > { %1915 = vset.pattern.permute.xlu1 %v2088_v7 }
  0x58   : > { %765 = vperm.xlu0 %1920, %v739_v26   ;;  %593 = vperm.xlu1 %1915, %v551_v27   ;;  %v752_v27 = vld [vmem:[%s2632_s4 + $0x78] sm:$0xff] }
  0x5c   : > { %775 = vperm.xlu0 %1920, %v741_v28   ;;  %397 = vperm.xlu1 %1915, %v339_v9   ;;  %v746_v9 = vld [vmem:[%s2632_s4 + $0x48] sm:$0xff] }
  0x60   : > { %785 = vperm.xlu0 %1920, %v743_v29   ;;  %402 = vperm.xlu1 %1915, %v340_v30  }
  0x64   : > { %795 = vperm.xlu0 %1920, %v745_v31   ;;  %1916 = vset.pattern.permute.xlu1 %v2087_v2 }
  0x65   : > { %490 = vperm.xlu1 %1916, %v340_v30  }
  0x68   : > { %805 = vperm.xlu0 %1920, %v747_v32  }
  0x69   : > { %1917 = vset.pattern.permute.xlu1 %v2088_v7 }
  0x6a   : > { %603 = vperm.xlu1 %1917, %v553_v33  }
  0x6c   : > { %815 = vperm.xlu0 %1920, %v749_v34  }
  0x6e   : > { %407 = vperm.xlu1 %1917, %v2225_v11  }
  0x70   : > { %825 = vperm.xlu0 %1920, %v751_v35  }
  0x72   : > { %412 = vperm.xlu1 %1917, %v342_v36  }
  0x74   : > { %1076 = vperm.xlu0 %1920, %v1058_v37  }
  0x76   : > { %1918 = vset.pattern.permute.xlu1 %v2087_v2 }
  0x77   : > { %498 = vperm.xlu1 %1918, %v342_v36   ;;  %v1059_v36 = vld [vmem:[%s2634_s6 + $0x8] sm:$0xff] }
  0x78   : > { %1086 = vperm.xlu0 %1920, %v1060_v38  }
  0x7b   : > { %1919 = vset.pattern.permute.xlu1 %v2088_v7 }
  0x7c   : > { %1096 = vperm.xlu0 %1920, %v1062_v39   ;;  %613 = vperm.xlu1 %1919, %v555_v40  }
  0x80   : > { %1106 = vperm.xlu0 %1920, %v1064_v41   ;;  %417 = vperm.xlu1 %1919, %v2232_v12  }
  0x84   : > { %1116 = vperm.xlu0 %1920, %v1066_v42   ;;  %422 = vperm.xlu1 %1919, %v344_v43  }
  0x88   : > { %1126 = vperm.xlu0 %1920, %v1068_v44   ;;  %1921 = vset.pattern.permute.xlu1 %v2087_v2 }
  0x89   : > { %506 = vperm.xlu1 %1921, %v344_v43  }
  0x8c   : > { %1136 = vperm.xlu0 %1920, %v1070_v45  }
  0x8d   : > { %1922 = vset.pattern.permute.xlu1 %v2088_v7  ;;  %v427_v7 = vsub.s32 0, %v426_v0 }
  0x8e   : > { %623 = vperm.xlu1 %1922, %v557_v46   ;;  %v447_v48 = vpop.permute.xlu1 %446  ;;  %v455_v49 = vpop.permute.xlu0 %454  ;;  %v1061_v46 = vld [vmem:[%s2634_s6 + $0x18] sm:$0xff] }
  0x8f   : > { %v2398_v12 = vrot.slane %v328_v5, %v427_v7  ;;  %v513_v15 = vmul.f32 %v2396_v10, %v447_v48  ;;  %v515_v23 = vmul.f32 %v2396_v10, %v455_v49 }
  0x90   : > { %1146 = vperm.xlu0 %1920, %v1072_v47  }
  0x92   : > { %633 = vperm.xlu1 %1922, %v559_v50   ;;  %v451_v52 = vpop.permute.xlu1 %450  ;;  %v2361_v53 = vpop.permute.xlu0 %462 }
  0x93   : > { %v514_v28 = vmul.f32 %v2396_v10, %v451_v52  ;;  %v1063_v52 = vld [vmem:[%s2634_s6 + $0x28] sm:$0xff] }
  0x94   : > { %1367 = vperm.xlu0 %1920, %v1364_v51  }
  0x96   : > { %638 = vperm.xlu1 %1922, %v560_v54   ;;  %v2366_v55 = vpop.permute.xlu0 %470  ;;  %v517_v54 = vmul.f32 %v2396_v10, %v2361_v53 }
  0x97   : > { %v363_v56 = vpop.permute.xlu1 %362 }
  0x98   : > { %v432_v37 = vmul.f32 %v2398_v12, %v363_v56 }
  0x9a   : > { %760 = vperm.xlu1 %1922, %v738_v57   ;;  %v2372_v58 = vpop.permute.xlu0 %478 }
  0x9c   : > { %v459_v61 = vpop.permute.xlu1 %458 }
  0x9d   : > { %v516_v31 = vmul.f32 %v2396_v10, %v459_v61 }
  0x9e   : > { %770 = vperm.xlu1 %1922, %v740_v59   ;;  %v2378_v62 = vpop.permute.xlu0 %486 }
  0x9f   : > { %v532_v43 = vadd.f32 %v516_v31, %v432_v37  ;;  %v519_v31 = vmul.f32 %v2396_v10, %v2366_v55 }
  0xa1   : > { %v564_v1 = vpop.permute.xlu1 %563 }
  0xa2   : > { %780 = vperm.xlu1 %1922, %v742_v63   ;;  %v2386_v2 = vpop.permute.xlu0 %494  ;;  %v1065_v63 = vld [vmem:[%s2634_s6 + $0x38] sm:$0xff] }
  0xa5   : > { %v368_v6 = vpop.permute.xlu1 %367 }
  0xa6   : > { %790 = vperm.xlu1 %1922, %v744_v3   ;;  %v2391_v8 = vpop.permute.xlu0 %502  ;;  %v433_v56 = vmul.f32 %v2398_v12, %v368_v6  ;;  %v1067_v6 = vld [vmem:[%s2634_s6 + $0x48] sm:$0xff] }
  0xa8   : > { %v533_v0 = vadd.f32 %v517_v54, %v433_v56  ;;  %v521_v54 = vmul.f32 %v2396_v10, %v2372_v58 }
  0xa9   : > { %v373_v11 = vpop.permute.xlu1 %372 }
  0xaa   : > { %800 = vperm.xlu1 %1922, %v746_v9   ;;  %v434_v47 = vmul.f32 %v2398_v12, %v373_v11 }
  0xab   : > { %v348_v13 = vpop.permute.xlu0 %347 }
  0xac   : > { %v429_v16 = vmul.f32 %v2398_v12, %v348_v13 }
  0xae   : > { %v529_v18 = vadd.f32 %v513_v15, %v429_v16  ;;  %810 = vperm.xlu1 %1922, %v748_v14   ;;  %v467_v19 = vpop.permute.xlu1 %466 }
  0xaf   : > { %v353_v20 = vpop.permute.xlu0 %352  ;;  %v518_v40 = vmul.f32 %v2396_v10, %v467_v19 }
  0xb0   : > { %v641_v22 = vadd.f32 %v564_v1, %v529_v18  ;;  %v430_v24 = vmul.f32 %v2398_v12, %v353_v20  ;;  %v1069_v20 = vld [vmem:[%s2634_s6 + $0x58] sm:$0xff] }
  0xb1   : > { %v534_v50 = vadd.f32 %v518_v40, %v434_v47 }
  0xb2   : > { %820 = vperm.xlu1 %1922, %v750_v21   ;;  %v657_v30 = vmul.f32 0.5, %v641_v22  ;;  %v530_v33 = vadd.f32 %v514_v28, %v430_v24  ;;  %v1071_v28 = vld [vmem:[%s2634_s6 + $0x68] sm:$0xff] }
  0xb3   : > { %v358_v25 = vpop.permute.xlu0 %357  ;;  %v574_v26 = vpop.permute.xlu1 %573 }
  0xb4   : > { %v431_v29 = vmul.f32 %v2398_v12, %v358_v25  ;;  %1923 = vtanh.f32 %v657_v30 }
  0xb6   : > { %v531_v32 = vadd.f32 %v515_v23, %v431_v29  ;;  %830 = vperm.xlu1 %1922, %v752_v27  }
  0xb7   : > { %v569_v34 = vpop.permute.xlu0 %568  ;;  %v2419_v35 = vpop.permute.xlu1 %377 }
  0xb8   : > { %v643_v38 = vadd.f32 %v574_v26, %v531_v32  ;;  %v642_v39 = vadd.f32 %v569_v34, %v530_v33  ;;  %v435_v32 = vmul.f32 %v2398_v12, %v2419_v35 }
  0xba   : > { %v659_v41 = vmul.f32 0.5, %v643_v38  ;;  %v658_v42 = vmul.f32 0.5, %v642_v39  ;;  %1081 = vperm.xlu1 %1922, %v1059_v36   ;;  %v1073_v36 = vld [vmem:[%s2634_s6 + $0x78] sm:$0xff]  ;;  %v535_v40 = vadd.f32 %v519_v31, %v435_v32 }
  0xbb   : > { %v579_v44 = vpop.permute.xlu0 %578  ;;  %v383_v45 = vpop.permute.xlu1 %382 }
  0xbc   : > { %1925 = vtanh.f32 %v659_v41  ;;  %v644_v48 = vadd.f32 %v579_v44, %v532_v43  ;;  %v436_v16 = vmul.f32 %v2398_v12, %v383_v45 }
  0xbd   : > { %1927 = vtanh.f32 %v658_v42 }
  0xbe   : > { %v660_v49 = vmul.f32 0.5, %v644_v48  ;;  %1091 = vperm.xlu1 %1922, %v1061_v46   ;;  %v1924_v61 = vpop.eup %1923 }
  0xbf   : > { %v589_v51 = vpop.permute.xlu0 %588  ;;  %v689_v5 = vadd.f32 1.0, %v1924_v61 }
  0xc0   : > { %1929 = vtanh.f32 %v660_v49  ;;  %v646_v57 = vadd.f32 %v589_v51, %v534_v50  ;;  %v475_v59 = vpop.permute.xlu1 %474 }
  0xc1   : > { %v520_v7 = vmul.f32 %v2396_v10, %v475_v59  ;;  %v705_v17 = vmul.f32 0.5, %v689_v5 }
  0xc2   : > { %v662_v60 = vmul.f32 0.5, %v646_v57  ;;  %1101 = vperm.xlu1 %1922, %v1063_v52  }
  0xc3   : > { %v536_v21 = vadd.f32 %v520_v7, %v436_v16  ;;  %v599_v25 = vpop.permute.xlu0 %598 }
  0xc4   : > { %1931 = vtanh.f32 %v662_v60 }
  0xc5   : > { %v584_v1 = vpop.permute.xlu1 %583  ;;  %v648_v30 = vadd.f32 %v599_v25, %v536_v21  ;;  %v523_v21 = vmul.f32 %v2396_v10, %v2378_v62 }
  0xc6   : > { %v1926_v3 = vpop.eup %1925  ;;  %v645_v4 = vadd.f32 %v584_v1, %v533_v0  ;;  %1111 = vperm.xlu1 %1922, %v1065_v63  }
  0xc7   : > { %v1928_v53 = vpop.eup %1927  ;;  %v691_v13 = vadd.f32 1.0, %v1926_v3  ;;  %v664_v38 = vmul.f32 0.5, %v648_v30  ;;  %v609_v50 = vpop.permute.xlu0 %608 }
  0xc8   : > { %v661_v9 = vmul.f32 0.5, %v645_v4  ;;  %v690_v11 = vadd.f32 1.0, %v1928_v53 }
  0xc9   : > { %v388_v14 = vpop.permute.xlu1 %387  ;;  %v707_v23 = vmul.f32 0.5, %v691_v13 }
  0xca   : > { %v1930_v15 = vpop.eup %1929  ;;  %1933 = vtanh.f32 %v661_v9  ;;  %1121 = vperm.xlu1 %1922, %v1067_v6   ;;  %v706_v18 = vmul.f32 0.5, %v690_v11  ;;  %v437_v56 = vmul.f32 %v2398_v12, %v388_v14 }
  0xcb   : > { %v692_v19 = vadd.f32 1.0, %v1930_v15  ;;  %1935 = vtanh.f32 %v664_v38  ;;  %v619_v14 = vpop.permute.xlu0 %618 }
  0xcc   : > { %v1773_v22 = vpack.c.bf16 %v706_v18, %v705_v17  ;;  %v537_v0 = vadd.f32 %v521_v54, %v437_v56 }
  0xcd   : > { %v708_v24 = vmul.f32 0.5, %v692_v19  ;;  %v393_v26 = vpop.permute.xlu1 %392 }
  0xce   : > { %1774 = vmatprep.subr.bf16.mxu0 %v1773_v22  ;;  %1131 = vperm.xlu1 %1922, %v1069_v20   ;;  %v1932_v29 = vpop.eup %1931  ;;  %v438_v47 = vmul.f32 %v2398_v12, %v393_v26 }
  0xcf   : > { %1776 = vmatpush3.bf16.msra.mxu0 %v1773_v22  ;;  %v1777_v27 = vpack.c.bf16 %v708_v24, %v707_v23  ;;  %v694_v34 = vadd.f32 1.0, %v1932_v29 }
  0xd1   : > { %1778 = vmatprep.subr.bf16.mxu0 %v1777_v27  ;;  %v710_v41 = vmul.f32 0.5, %v694_v34 }
  0xd2   : > { %1141 = vperm.xlu1 %1922, %v1071_v28   ;;  %v483_v33 = vpop.permute.xlu1 %482 }
  0xd3   : > { %1780 = vmatpush3.bf16.msra.mxu0 %v1777_v27  ;;  %v522_v35 = vmul.f32 %v2396_v10, %v483_v33 }
  0xd4   : > { %v1934_v37 = vpop.eup %1933 }
  0xd5   : > { %v693_v39 = vadd.f32 1.0, %v1934_v37  ;;  %v538_v48 = vadd.f32 %v522_v35, %v438_v47  ;;  %v1936_v51 = vpop.eup %1935 }
  0xd6   : > { %1151 = vperm.xlu1 %1922, %v1073_v36   ;;  %v696_v59 = vadd.f32 1.0, %v1936_v51  ;;  %v629_v36 = vpop.permute.xlu0 %628 }
  0xd7   : > { %v709_v42 = vmul.f32 0.5, %v693_v39  ;;  %v594_v43 = vpop.permute.xlu1 %593  ;;  %v650_v52 = vadd.f32 %v609_v50, %v538_v48 }
  0xd8   : > { %v647_v55 = vadd.f32 %v594_v43, %v535_v40  ;;  %v712_v1 = vmul.f32 0.5, %v696_v59  ;;  %v525_v43 = vmul.f32 %v2396_v10, %v2386_v2 }
  0xd9   : > { %v1781_v44 = vpack.c.bf16 %v710_v41, %v709_v42  ;;  %v666_v61 = vmul.f32 0.5, %v650_v52 }
  0xda   : > { %v663_v45 = vmul.f32 0.5, %v647_v55 }
  0xdb   : > { %v398_v46 = vpop.permute.xlu1 %397  ;;  %1782 = vmatprep.subr.bf16.mxu0 %v1781_v44 }
  0xdc   : > { %1937 = vtanh.f32 %v663_v45  ;;  %1784 = vmatpush3.bf16.msra.mxu0 %v1781_v44  ;;  %v439_v17 = vmul.f32 %v2398_v12, %v398_v46 }
  0xdd   : > { %1939 = vtanh.f32 %v666_v61 }
  0xde   : > { %v539_v24 = vadd.f32 %v523_v21, %v439_v17  ;;  %v724_v17 = vld [vmem:[%s2631_s3 + $0x18] sm:$0xff] }
  0xdf   : > { %v403_v49 = vpop.permute.xlu1 %402  ;;  %v728_v21 = vld [vmem:[%s2631_s3 + $0x38] sm:$0xff] }
  0xe0   : > { %v440_v58 = vmul.f32 %v2398_v12, %v403_v49  ;;  %v527_v49 = vmul.f32 %v2396_v10, %v2391_v8 }
  0xe4   : > { %v491_v57 = vpop.permute.xlu1 %490 }
  0xe5   : > { %v524_v6 = vmul.f32 %v2396_v10, %v491_v57 }
  0xe6   : > { %v1938_v60 = vpop.eup %1937 }
  0xe7   : > { %v695_v63 = vadd.f32 1.0, %v1938_v60  ;;  %v540_v11 = vadd.f32 %v524_v6, %v440_v58  ;;  %v1940_v15 = vpop.eup %1939 }
  0xe8   : > { %v698_v19 = vadd.f32 1.0, %v1940_v15  ;;  %v722_v15 = vld [vmem:[%s2631_s3 + $0x8] sm:$0xff] }
  0xe9   : > { %v711_v3 = vmul.f32 0.5, %v695_v63  ;;  %v604_v4 = vpop.permute.xlu1 %603  ;;  %v652_v16 = vadd.f32 %v619_v14, %v540_v11 }
  0xea   : > { %v649_v5 = vadd.f32 %v604_v4, %v537_v0  ;;  %v714_v27 = vmul.f32 0.5, %v698_v19  ;;  %v726_v19 = vld [vmem:[%s2631_s3 + $0x28] sm:$0xff] }
  0xeb   : > { %v1785_v53 = vpack.c.bf16 %v712_v1, %v711_v3  ;;  %v668_v22 = vmul.f32 0.5, %v652_v16  ;;  %v723_v16 = vld [vmem:[%s2631_s3 + $0x10] sm:$0xff] }
  0xec   : > { %v665_v7 = vmul.f32 0.5, %v649_v5 }
  0xed   : > { %v408_v9 = vpop.permute.xlu1 %407  ;;  %1786 = vmatprep.subr.bf16.mxu0 %v1785_v53 }
  0xee   : > { %1941 = vtanh.f32 %v665_v7  ;;  %1788 = vmatpush3.bf16.msra.mxu0 %v1785_v53  ;;  %v441_v39 = vmul.f32 %v2398_v12, %v408_v9 }
  0xef   : > { %1943 = vtanh.f32 %v668_v22  ;;  %v729_v22 = vld [vmem:[%s2631_s3 + $0x40] sm:$0xff] }
  0xf0   : > { %v541_v45 = vadd.f32 %v525_v43, %v441_v39 }
  0xf1   : > { %v413_v13 = vpop.permute.xlu1 %412 }
  0xf2   : > { %v442_v33 = vmul.f32 %v2398_v12, %v413_v13 }
  0xf6   : > { %v499_v18 = vpop.permute.xlu1 %498 }
  0xf7   : > { %v526_v30 = vmul.f32 %v2396_v10, %v499_v18  ;;  %v725_v18 = vld [vmem:[%s2631_s3 + $0x20] sm:$0xff] }
  0xf8   : > { %v1942_v20 = vpop.eup %1941 }
  0xf9   : > { %v697_v23 = vadd.f32 1.0, %v1942_v20  ;;  %v542_v34 = vadd.f32 %v526_v30, %v442_v33  ;;  %v1944_v37 = vpop.eup %1943  ;;  %v727_v20 = vld [vmem:[%s2631_s3 + $0x30] sm:$0xff]  ;;  %v1042_v30 = vld [vmem:[%s2633_s5] sm:$0xff] }
  0xfa   : > { %v700_v41 = vadd.f32 1.0, %v1944_v37  ;;  %1714 = vmatprep.mubr.f32.mxu1 %v1042_v30 }
  0xfb   : > { %v713_v25 = vmul.f32 0.5, %v697_v23  ;;  %v614_v26 = vpop.permute.xlu1 %613  ;;  %v654_v38 = vadd.f32 %v629_v36, %v542_v34  ;;  %v730_v23 = vld [vmem:[%s2631_s3 + $0x48] sm:$0xff] }
  0xfc   : > { %v651_v28 = vadd.f32 %v614_v26, %v539_v24  ;;  %v716_v48 = vmul.f32 0.5, %v700_v41  ;;  %v731_v24 = vld [vmem:[%s2631_s3 + $0x50] sm:$0xff]  ;;  %v733_v26 = vld [vmem:[%s2631_s3 + $0x60] sm:$0xff] }
  0xfd   : > { %v1789_v29 = vpack.c.bf16 %v714_v27, %v713_v25  ;;  %v670_v55 = vmul.f32 0.5, %v654_v38  ;;  %v732_v25 = vld [vmem:[%s2631_s3 + $0x58] sm:$0xff]  ;;  %v734_v27 = vld [vmem:[%s2631_s3 + $0x68] sm:$0xff] }
  0xfe   : > { %v667_v31 = vmul.f32 0.5, %v651_v28  ;;  %v735_v28 = vld [vmem:[%s2631_s3 + $0x70] sm:$0xff] }
  0xff   : > { %v418_v32 = vpop.permute.xlu1 %417  ;;  %1790 = vmatprep.subr.bf16.mxu0 %v1789_v29 }
 0x100   : > { %1945 = vtanh.f32 %v667_v31  ;;  %1792 = vmatpush3.bf16.msra.mxu0 %v1789_v29  ;;  %v443_v35 = vmul.f32 %v2398_v12, %v418_v32  ;;  %v736_v29 = vld [vmem:[%s2631_s3 + $0x78] sm:$0xff]  ;;  %v756_v32 = vpop.permute.xlu0 %755 }
 0x101   : > { %1947 = vtanh.f32 %v670_v55 }
 0x102   : > { %v543_v56 = vadd.f32 %v527_v49, %v443_v35 }
 0x103   : > { %v423_v62 = vpop.permute.xlu1 %422 }
 0x104   : > { %v444_v2 = vmul.f32 %v2398_v12, %v423_v62  ;;  %v766_v34 = vpop.permute.xlu0 %765 }
 0x108   : > { %v507_v40 = vpop.permute.xlu1 %506  ;;  %v776_v36 = vpop.permute.xlu0 %775 }
 0x109   : > { %v528_v52 = vmul.f32 %v2396_v10, %v507_v40 }
 0x10a   : > { %v1946_v42 = vpop.eup %1945 }
 0x10b   : > { %v699_v44 = vadd.f32 1.0, %v1946_v42  ;;  %v544_v61 = vadd.f32 %v528_v52, %v444_v2  ;;  %v1948_v8 = vpop.eup %1947 }
 0x10c   : > { %v702_v3 = vadd.f32 1.0, %v1948_v8 }
 0x10d   : > { %v715_v46 = vmul.f32 0.5, %v699_v44  ;;  %v624_v47 = vpop.permute.xlu1 %623  ;;  %v786_v44 = vpop.permute.xlu0 %785 }
 0x10e   : > { %v653_v50 = vadd.f32 %v624_v47, %v541_v45  ;;  %v718_v53 = vmul.f32 0.5, %v702_v3 }
 0x10f   : > { %v1793_v51 = vpack.c.bf16 %v716_v48, %v715_v46 }
 0x110   : > { %v669_v54 = vmul.f32 0.5, %v653_v50 }
 0x111   : > { %v634_v57 = vpop.permute.xlu1 %633  ;;  %1794 = vmatprep.subr.bf16.mxu0 %v1793_v51 }
 0x112   : > { %1949 = vtanh.f32 %v669_v54  ;;  %v655_v59 = vadd.f32 %v634_v57, %v543_v56  ;;  %1796 = vmatpush3.bf16.msra.mxu0 %v1793_v51  ;;  %v796_v56 = vpop.permute.xlu0 %795 }
 0x114   : > { %v671_v60 = vmul.f32 0.5, %v655_v59 }
 0x115   : > { %v639_v63 = vpop.permute.xlu1 %638 }
 0x116   : > { %1951 = vtanh.f32 %v671_v60  ;;  %v656_v0 = vadd.f32 %v639_v63, %v544_v61 }
 0x118   : > { %v672_v1 = vmul.f32 0.5, %v656_v0 }
 0x119   : > { %v761_v31 = vpop.permute.xlu1 %760 }
 0x11a   : > { %1953 = vtanh.f32 %v672_v1 }
 0x11c   : > { %v1950_v4 = vpop.eup %1949 }
 0x11d   : > { %v701_v10 = vadd.f32 1.0, %v1950_v4  ;;  %v771_v33 = vpop.permute.xlu1 %770 }
 0x11f   : > { %v717_v5 = vmul.f32 0.5, %v701_v10 }
 0x120   : > { %v1952_v6 = vpop.eup %1951 }
 0x121   : > { %v1797_v7 = vpack.c.bf16 %v718_v53, %v717_v5  ;;  %v703_v9 = vadd.f32 1.0, %v1952_v6  ;;  %v781_v62 = vpop.permute.xlu1 %780  ;;  %v806_v53 = vpop.permute.xlu0 %805 }
 0x123   : > { %1798 = vmatprep.subr.bf16.mxu0 %v1797_v7  ;;  %v719_v11 = vmul.f32 0.5, %v703_v9 }
 0x124   : > { %v1954_v12 = vpop.eup %1953  ;;  %1800 = vmatpush3.bf16.msra.mxu0 %v1797_v7 }
 0x125   : > { %v704_v58 = vadd.f32 1.0, %v1954_v12  ;;  %v791_v42 = vpop.permute.xlu1 %790 }
 0x127   : > { %v720_v13 = vmul.f32 0.5, %v704_v58 }
 0x129   : > { %v1801_v14 = vpack.c.bf16 %v720_v13, %v719_v11  ;;  %v801_v52 = vpop.permute.xlu1 %800 }
 0x12b   : > { %1802 = vmatprep.subr.bf16.mxu0 %v1801_v14 }
 0x12c   : > { %1804 = vmatpush3.bf16.msra.mxu0 %v1801_v14 }
 0x12d   : > { %v811_v3 = vpop.permute.xlu1 %810 }
 0x12f   : > { %1659 = vmatmul.mubr.f32.vlgmr.msra.gmra.mrb[0].mxu0 %v722_v15 }
 0x130   : > { %1661 = vmatprep.mubr.f32.mxu0 %v723_v16 }
 0x133   : > { %1662 = vmatmul.mubr.f32.gmra.mrb[2].mxu0 %v724_v17 }
 0x134   : > { %1664 = vmatprep.mubr.f32.mxu0 %v725_v18 }
 0x137   : > { %1665 = vmatmul.mubr.f32.gmra.mrb[4].mxu0 %v726_v19 }
 0x138   : > { %1667 = vmatprep.mubr.f32.mxu0 %v727_v20 }
 0x13b   : > { %1668 = vmatmul.mubr.f32.gmra.mrb[6].mxu0 %v728_v21 }
 0x13c   : > { %1670 = vmatprep.mubr.f32.mxu0 %v729_v22 }
 0x13f   : > { %1671 = vmatmul.mubr.f32.gmra.mrb[8].mxu0 %v730_v23  ;;  %v821_v23 = vpop.permute.xlu1 %820 }
 0x140   : > { %1673 = vmatprep.mubr.f32.mxu0 %v731_v24 }
 0x143   : > { %1674 = vmatmul.mubr.f32.gmra.mrb[10].mxu0 %v732_v25 }
 0x144   : > { %1676 = vmatprep.mubr.f32.mxu0 %v733_v26 }
 0x147   : > { %1677 = vmatmul.mubr.f32.gmra.mrb[12].mxu0 %v734_v27  ;;  %v816_v27 = vpop.permute.xlu0 %815 }
 0x148   : > { %1679 = vmatprep.mubr.f32.mxu0 %v735_v28 }
 0x14b   : > { %1680 = vmatmul.mubr.f32.gmra.mrb[14].mxu0 %v736_v29 }
 0x202   : > { %v1660_v37 = vpop.f32.mrb[0].mxu0 }
 0x203   : > { %v905_v38 = vadd.f32 %v1660_v37, %v761_v31  ;;  %v899_v39 = vpop.f32.mrb[1].mxu0 }
 0x204   : > { %v900_v40 = vadd.f32 %v899_v39, %v756_v32 }
 0x205   : > { %v979_v41 = vmul.f32 0.5, %v905_v38 }
 0x206   : > { %v978_v43 = vmul.f32 0.5, %v900_v40  ;;  %v1663_v55 = vpop.f32.mrb[2].mxu0 }
 0x207   : > { %1955 = vtanh.f32 %v979_v41  ;;  %v915_v35 = vadd.f32 %v1663_v55, %v771_v33  ;;  %v909_v45 = vpop.f32.mrb[3].mxu0  ;;  %v831_v55 = vpop.permute.xlu1 %830 }
 0x208   : > { %1957 = vtanh.f32 %v978_v43  ;;  %v910_v46 = vadd.f32 %v909_v45, %v766_v34 }
 0x209   : > { %v981_v47 = vmul.f32 0.5, %v915_v35 }
 0x20a   : > { %v980_v48 = vmul.f32 0.5, %v910_v46  ;;  %v1666_v49 = vpop.f32.mrb[4].mxu0  ;;  %v826_v46 = vpop.permute.xlu0 %825 }
 0x20b   : > { %1959 = vtanh.f32 %v981_v47  ;;  %v925_v50 = vadd.f32 %v1666_v49, %v781_v62  ;;  %v919_v51 = vpop.f32.mrb[5].mxu0 }
 0x20c   : > { %1961 = vtanh.f32 %v980_v48  ;;  %v920_v54 = vadd.f32 %v919_v51, %v776_v36 }
 0x20d   : > { %v983_v57 = vmul.f32 0.5, %v925_v50 }
 0x20e   : > { %v982_v2 = vmul.f32 0.5, %v920_v54  ;;  %v1669_v59 = vpop.f32.mrb[6].mxu0 }
 0x20f   : > { %1963 = vtanh.f32 %v983_v57  ;;  %v935_v60 = vadd.f32 %v1669_v59, %v791_v42  ;;  %v929_v61 = vpop.f32.mrb[7].mxu0 }
 0x210   : > { %1965 = vtanh.f32 %v982_v2  ;;  %v930_v63 = vadd.f32 %v929_v61, %v786_v44 }
 0x211   : > { %v1956_v0 = vpop.eup %1955  ;;  %v985_v8 = vmul.f32 0.5, %v935_v60 }
 0x212   : > { %v1958_v1 = vpop.eup %1957  ;;  %v984_v4 = vmul.f32 0.5, %v930_v63  ;;  %v1672_v10 = vpop.f32.mrb[8].mxu0  ;;  %v1011_v5 = vadd.f32 1.0, %v1956_v0 }
 0x213   : > { %1967 = vtanh.f32 %v985_v8  ;;  %v945_v6 = vadd.f32 %v1672_v10, %v801_v52  ;;  %v939_v7 = vpop.f32.mrb[9].mxu0  ;;  %v1010_v9 = vadd.f32 1.0, %v1958_v1 }
 0x214   : > { %1969 = vtanh.f32 %v984_v4  ;;  %v940_v12 = vadd.f32 %v939_v7, %v796_v56  ;;  %v1027_v58 = vmul.f32 0.5, %v1011_v5 }
 0x215   : > { %v1960_v11 = vpop.eup %1959  ;;  %v987_v13 = vmul.f32 0.5, %v945_v6  ;;  %v1026_v14 = vmul.f32 0.5, %v1010_v9 }
 0x216   : > { %v1962_v15 = vpop.eup %1961  ;;  %v1013_v16 = vadd.f32 1.0, %v1960_v11  ;;  %v986_v17 = vmul.f32 0.5, %v940_v12  ;;  %v1675_v18 = vpop.f32.mrb[10].mxu0 }
 0x217   : > { %v1012_v19 = vadd.f32 1.0, %v1962_v15  ;;  %1971 = vtanh.f32 %v987_v13  ;;  %v955_v20 = vadd.f32 %v1675_v18, %v811_v3  ;;  %v949_v21 = vpop.f32.mrb[11].mxu0  ;;  %v1805_v22 = vpack.c.bf16 %v1027_v58, %v1026_v14 }
 0x218   : > { %v1029_v24 = vmul.f32 0.5, %v1013_v16  ;;  %1973 = vtanh.f32 %v986_v17  ;;  %v950_v25 = vadd.f32 %v949_v21, %v806_v53 }
 0x219   : > { %v1964_v26 = vpop.eup %1963  ;;  %v1028_v28 = vmul.f32 0.5, %v1012_v19  ;;  %v989_v29 = vmul.f32 0.5, %v955_v20  ;;  %1806 = vmatprep.subr.bf16.mxu1 %v1805_v22 }
 0x21a   : > { %v1966_v30 = vpop.eup %1965  ;;  %v1015_v31 = vadd.f32 1.0, %v1964_v26  ;;  %v988_v32 = vmul.f32 0.5, %v950_v25  ;;  %v1678_v33 = vpop.f32.mrb[12].mxu0  ;;  %1808 = vmatpush3.bf16.msra.mxu1 %v1805_v22  ;;  %v1045_v25 = vld [vmem:[%s2633_s5 + $0x18] sm:$0xff]  ;;  %v1046_v26 = vld [vmem:[%s2633_s5 + $0x20] sm:$0xff] }
 0x21b   : > { %v1014_v34 = vadd.f32 1.0, %v1966_v30  ;;  %1975 = vtanh.f32 %v989_v29  ;;  %v965_v62 = vadd.f32 %v1678_v33, %v821_v23  ;;  %v959_v36 = vpop.f32.mrb[13].mxu0  ;;  %v1809_v37 = vpack.c.bf16 %v1029_v24, %v1028_v28  ;;  %v1043_v23 = vld [vmem:[%s2633_s5 + $0x8] sm:$0xff]  ;;  %v1044_v24 = vld [vmem:[%s2633_s5 + $0x10] sm:$0xff]  ;;  %v1049_v29 = vld [vmem:[%s2633_s5 + $0x38] sm:$0xff] }
 0x21c   : > { %v1031_v38 = vmul.f32 0.5, %v1015_v31  ;;  %1977 = vtanh.f32 %v988_v32  ;;  %v960_v39 = vadd.f32 %v959_v36, %v816_v27  ;;  %v1047_v27 = vld [vmem:[%s2633_s5 + $0x28] sm:$0xff]  ;;  %v1048_v28 = vld [vmem:[%s2633_s5 + $0x30] sm:$0xff]  ;;  %v1050_v30 = vld [vmem:[%s2633_s5 + $0x40] sm:$0xff] }
 0x21d   : > { %v1968_v40 = vpop.eup %1967  ;;  %v1030_v41 = vmul.f32 0.5, %v1014_v34  ;;  %v991_v42 = vmul.f32 0.5, %v965_v62  ;;  %1810 = vmatprep.subr.bf16.mxu1 %v1809_v37  ;;  %v1051_v31 = vld [vmem:[%s2633_s5 + $0x48] sm:$0xff]  ;;  %v1052_v32 = vld [vmem:[%s2633_s5 + $0x50] sm:$0xff]  ;;  %v1053_v33 = vld [vmem:[%s2633_s5 + $0x58] sm:$0xff] }
 0x21e   : > { %v1970_v43 = vpop.eup %1969  ;;  %v1017_v44 = vadd.f32 1.0, %v1968_v40  ;;  %v990_v35 = vmul.f32 0.5, %v960_v39  ;;  %v1681_v45 = vpop.f32.mrb[14].mxu0  ;;  %1812 = vmatpush3.bf16.msra.mxu1 %v1809_v37  ;;  %v1054_v34 = vld [vmem:[%s2633_s5 + $0x60] sm:$0xff]  ;;  %v1055_v62 = vld [vmem:[%s2633_s5 + $0x68] sm:$0xff]  ;;  %v1056_v36 = vld [vmem:[%s2633_s5 + $0x70] sm:$0xff] }
 0x21f   : > { %v1016_v47 = vadd.f32 1.0, %v1970_v43  ;;  %1979 = vtanh.f32 %v991_v42  ;;  %v975_v48 = vadd.f32 %v1681_v45, %v831_v55  ;;  %v969_v49 = vpop.f32.mrb[15].mxu0  ;;  %v1813_v50 = vpack.c.bf16 %v1031_v38, %v1030_v41  ;;  %v1057_v37 = vld [vmem:[%s2633_s5 + $0x78] sm:$0xff]  ;;  %v1082_v40 = vpop.permute.xlu1 %1081 }
 0x220   : > { %v1033_v51 = vmul.f32 0.5, %v1017_v44  ;;  %1981 = vtanh.f32 %v990_v35  ;;  %v970_v52 = vadd.f32 %v969_v49, %v826_v46  ;;  %v2089_v38 = vmov 0.0|0.0   ;;  %v1077_v41 = vpop.permute.xlu0 %1076 }
 0x221   : > { %v1972_v54 = vpop.eup %1971  ;;  %v1032_v56 = vmul.f32 0.5, %v1016_v47  ;;  %v993_v57 = vmul.f32 0.5, %v975_v48  ;;  %1814 = vmatprep.subr.bf16.mxu1 %v1813_v50  ;;  %1837 = vmatprep.subr.bf16.mxu0 %v2089_v38  ;;  %v2091_v39 = vmov 0.0  }
 0x222   : > { %v1974_v2 = vpop.eup %1973  ;;  %v1019_v59 = vadd.f32 1.0, %v1972_v54  ;;  %v992_v60 = vmul.f32 0.5, %v970_v52  ;;  %1816 = vmatpush3.bf16.msra.mxu1 %v1813_v50  ;;  %1770 = vmatprep.mubr.msk.f32.mxu0 %vm2090_vm0, %v2091_v39 }
 0x223   : > { %v1018_v61 = vadd.f32 1.0, %v1974_v2  ;;  %1983 = vtanh.f32 %v993_v57  ;;  %v1817_v63 = vpack.c.bf16 %v1033_v51, %v1032_v56  ;;  %v1092_v42 = vpop.permute.xlu1 %1091 }
 0x224   : > { %v1035_v0 = vmul.f32 0.5, %v1019_v59  ;;  %1985 = vtanh.f32 %v992_v60  ;;  %v1087_v43 = vpop.permute.xlu0 %1086 }
 0x225   : > { %v1976_v8 = vpop.eup %1975  ;;  %v1034_v1 = vmul.f32 0.5, %v1018_v61  ;;  %1818 = vmatprep.subr.bf16.mxu1 %v1817_v63 }
 0x226   : > { %v1978_v3 = vpop.eup %1977  ;;  %v1021_v4 = vadd.f32 1.0, %v1976_v8  ;;  %1820 = vmatpush3.bf16.msra.mxu1 %v1817_v63 }
 0x227   : > { %v1020_v10 = vadd.f32 1.0, %v1978_v3  ;;  %v1821_v5 = vpack.c.bf16 %v1035_v0, %v1034_v1  ;;  %v1102_v55 = vpop.permute.xlu1 %1101 }
 0x228   : > { %v1037_v53 = vmul.f32 0.5, %v1021_v4  ;;  %v1097_v44 = vpop.permute.xlu0 %1096 }
 0x229   : > { %v1980_v6 = vpop.eup %1979  ;;  %v1036_v7 = vmul.f32 0.5, %v1020_v10  ;;  %1822 = vmatprep.subr.bf16.mxu1 %v1821_v5 }
 0x22a   : > { %v1982_v9 = vpop.eup %1981  ;;  %v1023_v12 = vadd.f32 1.0, %v1980_v6  ;;  %1824 = vmatpush3.bf16.msra.mxu1 %v1821_v5 }
 0x22b   : > { %v1022_v58 = vadd.f32 1.0, %v1982_v9  ;;  %v1825_v11 = vpack.c.bf16 %v1037_v53, %v1036_v7  ;;  %v1112_v49 = vpop.permute.xlu1 %1111 }
 0x22c   : > { %v1039_v13 = vmul.f32 0.5, %v1023_v12  ;;  %v1107_v52 = vpop.permute.xlu0 %1106 }
 0x22d   : > { %v1984_v14 = vpop.eup %1983  ;;  %v1038_v15 = vmul.f32 0.5, %v1022_v58  ;;  %1826 = vmatprep.subr.bf16.mxu1 %v1825_v11 }
 0x22e   : > { %v1986_v16 = vpop.eup %1985  ;;  %v1025_v17 = vadd.f32 1.0, %v1984_v14  ;;  %1828 = vmatpush3.bf16.msra.mxu1 %v1825_v11 }
 0x22f   : > { %v1024_v18 = vadd.f32 1.0, %v1986_v16  ;;  %v1829_v19 = vpack.c.bf16 %v1039_v13, %v1038_v15  ;;  %v1122_v0 = vpop.permute.xlu1 %1121 }
 0x230   : > { %v1041_v20 = vmul.f32 0.5, %v1025_v17  ;;  %v1117_v1 = vpop.permute.xlu0 %1116 }
 0x231   : > { %v1040_v21 = vmul.f32 0.5, %v1024_v18  ;;  %1830 = vmatprep.subr.bf16.mxu1 %v1829_v19 }
 0x232   : > { %1832 = vmatpush3.bf16.msra.mxu1 %v1829_v19 }
 0x233   : > { %v1833_v22 = vpack.c.bf16 %v1041_v20, %v1040_v21  ;;  %v1132_v58 = vpop.permute.xlu1 %1131 }
 0x234   : > { %v1127_v15 = vpop.permute.xlu0 %1126 }
 0x235   : > { %1834 = vmatprep.subr.bf16.mxu1 %v1833_v22 }
 0x236   : > { %1836 = vmatpush3.bf16.msra.mxu1 %v1833_v22 }
 0x239   : > { %1715 = vmatmul.mubr.f32.vlgmr.msra.gmra.mrb[0].mxu1 %v1043_v23 }
 0x23a   : > { %1717 = vmatprep.mubr.f32.mxu1 %v1044_v24 }
 0x23d   : > { %1718 = vmatmul.mubr.f32.gmra.mrb[2].mxu1 %v1045_v25 }
 0x23e   : > { %1720 = vmatprep.mubr.f32.mxu1 %v1046_v26 }
 0x241   : > { %1721 = vmatmul.mubr.f32.gmra.mrb[4].mxu1 %v1047_v27 }
 0x242   : > { %1723 = vmatprep.mubr.f32.mxu1 %v1048_v28 }
 0x245   : > { %1724 = vmatmul.mubr.f32.gmra.mrb[6].mxu1 %v1049_v29 }
 0x246   : > { %1726 = vmatprep.mubr.f32.mxu1 %v1050_v30 }
 0x249   : > { %1727 = vmatmul.mubr.f32.gmra.mrb[8].mxu1 %v1051_v31 }
 0x24a   : > { %1729 = vmatprep.mubr.f32.mxu1 %v1052_v32  ;;  %v1142_v32 = vpop.permute.xlu1 %1141 }
 0x24d   : > { %1730 = vmatmul.mubr.f32.gmra.mrb[10].mxu1 %v1053_v33 }
 0x24e   : > { %1732 = vmatprep.mubr.f32.mxu1 %v1054_v34 }
 0x251   : > { %1733 = vmatmul.mubr.f32.gmra.mrb[12].mxu1 %v1055_v62 }
 0x252   : > { %1735 = vmatprep.mubr.f32.mxu1 %v1056_v36  ;;  %v1137_v36 = vpop.permute.xlu0 %1136 }
 0x255   : > { %1736 = vmatmul.mubr.f32.gmra.mrb[14].mxu1 %v1057_v37 }
 0x30c   : > { %v1716_v35 = vpop.f32.mrb[0].mxu1 }
 0x30d   : > { %v1226_v45 = vadd.f32 %v1716_v35, %v1082_v40  ;;  %v1220_v46 = vpop.f32.mrb[1].mxu1 }
 0x30e   : > { %v1221_v47 = vadd.f32 %v1220_v46, %v1077_v41 }
 0x30f   : > { %v1300_v48 = vmul.f32 0.5, %v1226_v45 }
 0x310   : > { %v1299_v50 = vmul.f32 0.5, %v1221_v47  ;;  %v1719_v51 = vpop.f32.mrb[2].mxu1 }
 0x311   : > { %1987 = vtanh.f32 %v1300_v48  ;;  %v1236_v54 = vadd.f32 %v1719_v51, %v1092_v42  ;;  %v1230_v56 = vpop.f32.mrb[3].mxu1 }
 0x312   : > { %1989 = vtanh.f32 %v1299_v50  ;;  %v1231_v57 = vadd.f32 %v1230_v56, %v1087_v43 }
 0x313   : > { %v1302_v2 = vmul.f32 0.5, %v1236_v54 }
 0x314   : > { %v1301_v59 = vmul.f32 0.5, %v1231_v57  ;;  %v1722_v60 = vpop.f32.mrb[4].mxu1 }
 0x315   : > { %1991 = vtanh.f32 %v1302_v2  ;;  %v1246_v61 = vadd.f32 %v1722_v60, %v1102_v55  ;;  %v1240_v63 = vpop.f32.mrb[5].mxu1  ;;  %v1147_v2 = vpop.permute.xlu0 %1146 }
 0x316   : > { %1993 = vtanh.f32 %v1301_v59  ;;  %v1241_v8 = vadd.f32 %v1240_v63, %v1097_v44 }
 0x317   : > { %v1304_v3 = vmul.f32 0.5, %v1246_v61 }
 0x318   : > { %v1303_v4 = vmul.f32 0.5, %v1241_v8  ;;  %v1725_v10 = vpop.f32.mrb[6].mxu1 }
 0x319   : > { %1995 = vtanh.f32 %v1304_v3  ;;  %v1256_v5 = vadd.f32 %v1725_v10, %v1112_v49  ;;  %v1250_v53 = vpop.f32.mrb[7].mxu1 }
 0x31a   : > { %1997 = vtanh.f32 %v1303_v4  ;;  %v1251_v6 = vadd.f32 %v1250_v53, %v1107_v52  ;;  %v1152_v52 = vpop.permute.xlu1 %1151 }
 0x31b   : > { %v1988_v7 = vpop.eup %1987  ;;  %v1306_v9 = vmul.f32 0.5, %v1256_v5 }
 0x31c   : > { %v1990_v12 = vpop.eup %1989  ;;  %v1332_v11 = vadd.f32 1.0, %v1988_v7  ;;  %v1305_v13 = vmul.f32 0.5, %v1251_v6  ;;  %v1728_v14 = vpop.f32.mrb[8].mxu1 }
 0x31d   : > { %v1331_v16 = vadd.f32 1.0, %v1990_v12  ;;  %1999 = vtanh.f32 %v1306_v9  ;;  %v1266_v17 = vadd.f32 %v1728_v14, %v1122_v0  ;;  %v1260_v18 = vpop.f32.mrb[9].mxu1 }
 0x31e   : > { %v1348_v19 = vmul.f32 0.5, %v1332_v11  ;;  %2001 = vtanh.f32 %v1305_v13  ;;  %v1261_v20 = vadd.f32 %v1260_v18, %v1117_v1 }
 0x31f   : > { %v1992_v21 = vpop.eup %1991  ;;  %v1347_v22 = vmul.f32 0.5, %v1331_v16  ;;  %v1308_v23 = vmul.f32 0.5, %v1266_v17 }
 0x320   : > { %v1994_v24 = vpop.eup %1993  ;;  %v1334_v25 = vadd.f32 1.0, %v1992_v21  ;;  %v1307_v26 = vmul.f32 0.5, %v1261_v20  ;;  %v1731_v27 = vpop.f32.mrb[10].mxu1 }
 0x321   : > { %v1838_v28 = vpack.c.bf16 %v1348_v19, %v1347_v22  ;;  %v1333_v29 = vadd.f32 1.0, %v1994_v24  ;;  %2003 = vtanh.f32 %v1308_v23  ;;  %v1276_v30 = vadd.f32 %v1731_v27, %v1132_v58  ;;  %v1270_v31 = vpop.f32.mrb[11].mxu1 }
 0x322   : > { %v1350_v33 = vmul.f32 0.5, %v1334_v25  ;;  %2005 = vtanh.f32 %v1307_v26  ;;  %v1271_v34 = vadd.f32 %v1270_v31, %v1127_v15 }
 0x323   : > { %v1996_v62 = vpop.eup %1995  ;;  %v1349_v37 = vmul.f32 0.5, %v1333_v29  ;;  %v1310_v39 = vmul.f32 0.5, %v1276_v30  ;;  %1839 = vmatpush3.bf16.msra.mxu0 %v1838_v28 }
 0x324   : > { %v1998_v40 = vpop.eup %1997  ;;  %v1336_v41 = vadd.f32 1.0, %v1996_v62  ;;  %v1309_v42 = vmul.f32 0.5, %v1271_v34  ;;  %v1734_v43 = vpop.f32.mrb[12].mxu1  ;;  %1840 = vmatprep.subr.bf16.mxu0 %v2089_v38 }
 0x325   : > { %v1841_v55 = vpack.c.bf16 %v1350_v33, %v1349_v37  ;;  %v1335_v44 = vadd.f32 1.0, %v1998_v40  ;;  %2007 = vtanh.f32 %v1310_v39  ;;  %v1286_v35 = vadd.f32 %v1734_v43, %v1142_v32  ;;  %v1280_v45 = vpop.f32.mrb[13].mxu1  ;;  %v1363_v33 = vld [vmem:[%s2635_s7] sm:$0x3]  ;;  %v1368_v34 = vpop.permute.xlu0 %1367 }
 0x326   : > { %v1352_v46 = vmul.f32 0.5, %v1336_v41  ;;  %2009 = vtanh.f32 %v1309_v42  ;;  %v1281_v47 = vadd.f32 %v1280_v45, %v1137_v36 }
 0x327   : > { %v2000_v48 = vpop.eup %1999  ;;  %v1351_v49 = vmul.f32 0.5, %v1335_v44  ;;  %v1312_v50 = vmul.f32 0.5, %v1286_v35  ;;  %1842 = vmatpush3.bf16.msra.mxu0 %v1841_v55 }
 0x328   : > { %v2002_v51 = vpop.eup %2001  ;;  %v1338_v54 = vadd.f32 1.0, %v2000_v48  ;;  %v1311_v56 = vmul.f32 0.5, %v1281_v47  ;;  %v1737_v57 = vpop.f32.mrb[14].mxu1  ;;  %1843 = vmatprep.subr.bf16.mxu0 %v2089_v38 }
 0x329   : > { %v1844_v59 = vpack.c.bf16 %v1352_v46, %v1351_v49  ;;  %v1337_v60 = vadd.f32 1.0, %v2002_v51  ;;  %2011 = vtanh.f32 %v1312_v50  ;;  %v1296_v61 = vadd.f32 %v1737_v57, %v1152_v52  ;;  %v1290_v63 = vpop.f32.mrb[15].mxu1 }
 0x32a   : > { %v1354_v0 = vmul.f32 0.5, %v1338_v54  ;;  %2013 = vtanh.f32 %v1311_v56  ;;  %v1291_v8 = vadd.f32 %v1290_v63, %v1147_v2 }
 0x32b   : > { %v2004_v1 = vpop.eup %2003  ;;  %v1353_v3 = vmul.f32 0.5, %v1337_v60  ;;  %v1314_v4 = vmul.f32 0.5, %v1296_v61  ;;  %1845 = vmatpush3.bf16.msra.mxu0 %v1844_v59 }
 0x32c   : > { %v2006_v10 = vpop.eup %2005  ;;  %v1340_v5 = vadd.f32 1.0, %v2004_v1  ;;  %v1313_v53 = vmul.f32 0.5, %v1291_v8  ;;  %1846 = vmatprep.subr.bf16.mxu0 %v2089_v38 }
 0x32d   : > { %v1847_v6 = vpack.c.bf16 %v1354_v0, %v1353_v3  ;;  %v1339_v7 = vadd.f32 1.0, %v2006_v10  ;;  %2015 = vtanh.f32 %v1314_v4 }
 0x32e   : > { %v1356_v9 = vmul.f32 0.5, %v1340_v5  ;;  %2017 = vtanh.f32 %v1313_v53 }
 0x32f   : > { %v2008_v12 = vpop.eup %2007  ;;  %v1355_v58 = vmul.f32 0.5, %v1339_v7  ;;  %1848 = vmatpush3.bf16.msra.mxu0 %v1847_v6 }
 0x330   : > { %v2010_v11 = vpop.eup %2009  ;;  %v1342_v13 = vadd.f32 1.0, %v2008_v12  ;;  %1849 = vmatprep.subr.bf16.mxu0 %v2089_v38 }
 0x331   : > { %v1850_v14 = vpack.c.bf16 %v1356_v9, %v1355_v58  ;;  %v1341_v15 = vadd.f32 1.0, %v2010_v11 }
 0x332   : > { %v1358_v16 = vmul.f32 0.5, %v1342_v13 }
 0x333   : > { %v2012_v17 = vpop.eup %2011  ;;  %v1357_v18 = vmul.f32 0.5, %v1341_v15  ;;  %1851 = vmatpush3.bf16.msra.mxu0 %v1850_v14 }
 0x334   : > { %v2014_v19 = vpop.eup %2013  ;;  %v1344_v20 = vadd.f32 1.0, %v2012_v17  ;;  %1852 = vmatprep.subr.bf16.mxu0 %v2089_v38 }
 0x335   : > { %v1853_v21 = vpack.c.bf16 %v1358_v16, %v1357_v18  ;;  %v1343_v22 = vadd.f32 1.0, %v2014_v19 }
 0x336   : > { %v1360_v23 = vmul.f32 0.5, %v1344_v20 }
 0x337   : > { %v2016_v24 = vpop.eup %2015  ;;  %v1359_v25 = vmul.f32 0.5, %v1343_v22  ;;  %1854 = vmatpush3.bf16.msra.mxu0 %v1853_v21 }
 0x338   : > { %v2018_v26 = vpop.eup %2017  ;;  %v1346_v27 = vadd.f32 1.0, %v2016_v24  ;;  %1855 = vmatprep.subr.bf16.mxu0 %v2089_v38 }
 0x339   : > { %v1856_v28 = vpack.c.bf16 %v1360_v23, %v1359_v25  ;;  %v1345_v29 = vadd.f32 1.0, %v2018_v26 }
 0x33a   : > { %v1362_v30 = vmul.f32 0.5, %v1346_v27 }
 0x33b   : > { %v1361_v31 = vmul.f32 0.5, %v1345_v29  ;;  %1857 = vmatpush3.bf16.msra.mxu0 %v1856_v28 }
 0x33c   : > { %1858 = vmatprep.subr.bf16.mxu0 %v2089_v38 }
 0x33d   : > { %v1859_v32 = vpack.c.bf16 %v1362_v30, %v1361_v31 }
 0x33f   : > { %1860 = vmatpush3.bf16.msra.mxu0 %v1859_v32 }
 0x342   : > { %1771 = vmatmul.mubr.f32.vlgmr.msra.gmra.mrb[16].mxu0 %v1363_v33 }
 0x415   : > { %v1436_v62 = vpop.f32.mrb[16].mxu0 }
 0x416   : > { %v1437_v36 = vadd.f32 %v1436_v62, %v1368_v34  ;;  %v1772_v37 = vpop.f32.mrb[17].mxu0 }
 0x418   : > { %v1443_v39 = vand.u32 2147483647, %v1437_v36  ;;  %v1440_v47 = vmax.f32 %v1437_v36, 0.0  ;;  %vm1441_vm2 = vcmp.ne.f32.partialorder %v1437_v36, %v1437_v36 }
 0x41a   : > { %v1444_v40 = vsub.f32 0.0, %v1443_v39 }
 0x41c   : > { %v1445_v41 = vmul.f32 1.442695, %v1444_v40 }
 0x41e   : > { %2019 = vpow2.f32 %v1445_v41 }
 0x428   : > { %v2020_v42 = vpop.eup %2019 }
 0x429   : > { %v1447_v43 = vadd.f32 1.0, %v2020_v42  ;;  %v1450_v38 = vmul.f32 -0.5, %v2020_v42  ;;  %v1453_v44 = vand.u32 2147483647, %v2020_v42 }
 0x42b   : > { %2021 = vlog2.f32 %v1447_v43  ;;  %v1451_v55 = vadd.f32 1.0, %v1450_v38  ;;  %vm1454_vm1 = vcmp.lt.f32.partialorder %v1453_v44, 0.0004427343 }
 0x42d   : > { %v1452_v46 = vmul.f32 %v2020_v42, %v1451_v55 }
 0x435   : > { %v2022_v35 = vpop.eup %2021 }
 0x436   : > { %v1449_v45 = vmul.f32 0.6931472, %v2022_v35 }
 0x438   : > { %v1455_v48 = vsel %vm1454_vm1, %v1452_v46, %v1449_v45 }
 0x439   : > { %v1456_v49 = vadd.f32 %v1455_v48, %v1440_v47 }
 0x43b   : > { %v1457_v50 = vsel %vm1441_vm2, %v1437_v36, %v1456_v49 }
 0x43c   : > { %v1540_v51 = vadd.f32 -0.6931472, %v1457_v50 }
 0x43e   : > { %v1459_v52 = vmax.f32 %v1540_v51, 0.0 }
 0x440   : > { %1460 = vst [vmem:[%s323_s21] sm:$0x3] %v1459_v52 }
 0x441   : > { %2036 = shalt.err (!%p2033_p3)
}
 0x442   : > { %s2037_s14 = scalar_lea.hbm %s2586_s25, 32  ;;  %s2041_s21 = scalar_lea.hbm %s2637_s9, 64 }
 0x443   : > { %p2038_p4 = scmp.ne.s32.totalorder %s2586_s25, %s2037_s14  ;;  %p2042_p9 = scmp.lt.u32.totalorder %s2586_s25, %s2637_s9 }
 0x444   : > { %p2043_p10 = scmp.lt.u32.totalorder %s2041_s21, %s2037_s14  ;;  %p2045_p12 = scmp.lt.u32.totalorder %s2037_s14, %s2586_s25 }
 0x445   : > { %p2039_p7 = pnand %p2038_p4, %p2181_p5 }
 0x446   : > { %p2044_p11 = por %p2043_p10, %p2042_p9 }
 0x447   : > { %p2040_p8 = pneg %p2039_p7 }
 0x448   : > { %p2046_p13 = por %p2045_p12, %p2044_p11 }
 0x44a   : > { %p2047_p0 = pnand %p2046_p13, %p2040_p8 }
 0x44c   : > { %2050 = shalt.err (!%p2047_p0)
}
 0x44d   : > { %1861 = dma.vmem_to_hbm [thread:$0]  (%p2181_p5), %s2588_s22, 32, %s2586_s25, %s1462_s26  }
 0x44e PF: > { %p1867_p1 = scmp.ge.s32.totalorder %s2085_s12, 2  ;;  %s1487_s27 = sand.u32 1, %s2073_s30  }
 0x44f   : > { %s1488_s13 = scalar_lea.sflag [#allocation3], %s1487_s27 }
 0x450   : > { %p1864_p2 = pnand %p1867_p1, %p2185_p6 }
 0x452   : > { %2068 = dma.done.wait (!%p1864_p2), %s1488_s13, 32  }
 0x453   : > { %2070 = vsyncadd (!%p1864_p2), %s1488_s13, 4294967264  ;;  %p19_p3 = scmp.ge.s32.totalorder %s2168_s15, 4   ;;  %s2640_s30 = smov %s2077_s10 }
 0x454   : > { %s2641_s10 = smov %s2081_s11  ;;  %s2642_s11 = smov %s2179_s18 }
 0x455   : > { %s2643_s12 = smov %s2168_s15  ;;  %21 = sbr.rel (!%p19_p3) target bundleno = 3 (0x3), region = 91 }
 0x45c   :  { %1493 = vsyncpa [#allocation3], 1 }
 0x45d   :  { %1495 = vsyncpa [#allocation3 + $0x1], 1 }

</bundles_post_ra>
